<compile_context>
chip_gen: v5e
topology: v5e:2x2
jax: 0.10.0
libtpu: 0.0.40
codegen_flags: <defaults>
</compile_context>

<pallas_src>
import functools

import jax
import jax.numpy as jnp
from jax.experimental import pallas as pl
from jax.experimental.pallas import tpu as pltpu

LANES = 128     # lane width (last dim of every vreg)
SUBLANES = 8    # f32 sublane count (accumulator rows)


def _rows_per_vreg(dtype):
    """Sublane rows one vreg holds for this dtype (f32:8, bf16:16, int8/bool:32)."""
    itemsize = jnp.dtype(dtype).itemsize
    if itemsize >= 4:
        return 8
    return 8 * (4 // itemsize)


def _chip_config():
    """(max_tile_rows, num_slices), sized for f32 worst-case inputs."""
    try:
        kind = jax.devices()[0].device_kind.lower()
    except Exception:  # pragma: no cover - defensive; fall back to safe defaults
        kind = ""
    if "v7" in kind:
        # 2 TensorCores. 4096x128xf32 = 2 MiB per input per pipeline buffer
        # -> 12 MiB double-buffered: well under the 32 MiB default scoped VMEM
        # (64 MiB physical), while amortizing the ~0.35us/step overhead.
        return 4096, 2
    if "v6" in kind:
        # Single TC. 8192x128xf32 = 4 MiB per input per buffer -> 24 MiB
        # double-buffered, under the 32 MiB default scoped VMEM (128 MiB phys).
        return 8192, 1
    # v5e and unknown chips: 2048x128xf32 = 1 MiB per input per buffer
    # -> 6 MiB double-buffered, comfortably inside the 16 MiB default budget.
    return 2048, 1


def _masked_mse_kernel(x_ref, t_ref, m_ref, num_ref, den_ref, *,
                       tiles_per_slice, tile_rows, valid_rows, needs_mask):
    """Accumulate partial sums of ((x-t)*m)^2 and of m into resident out blocks.

    Grid = (num_slices, tiles_per_slice); axis 1 is the sequential reduction
    axis ("arbitrary"), axis 0 is split across TensorCores on megacore parts.
    """
    k = pl.program_id(1)

    @pl.when(k == 0)
    def _init():
        num_ref[...] = jnp.zeros_like(num_ref)
        den_ref[...] = jnp.zeros_like(den_ref)

    groups = tile_rows // SUBLANES

    def _accumulate(d, m):
        # Pure-VPU accumulation: collapse the tile's leading dim vreg-by-vreg
        # into the resident (8,128) output block (no per-step XLU reduce).
        num_ref[0] += jnp.sum((d * d).reshape(groups, SUBLANES, LANES), axis=0)
        den_ref[0] += jnp.sum(m.reshape(groups, SUBLANES, LANES), axis=0)

    # Upcast inside the kernel; HBM keeps the native (possibly narrow) dtype.
    x = x_ref[...].astype(jnp.float32)
    t = t_ref[...].astype(jnp.float32)
    m = m_ref[...].astype(jnp.float32)
    d = (x - t) * m                      # mask inside the square, per spec

    if not needs_mask:
        # Static fast path: tiling divides evenly, no masking code emitted.
        _accumulate(d, m)
    else:
        tile_id = pl.program_id(0) * tiles_per_slice + k
        row0 = tile_id * tile_rows

        @pl.when(row0 + tile_rows <= valid_rows)
        def _interior():
            _accumulate(d, m)

        @pl.when(row0 + tile_rows > valid_rows)
        def _boundary():
            # Ragged last tile or clamped duplicate block: zero contributions
            # from rows past the logical end.  jnp.where SELECTS a literal 0.0,
            # so NaN/Inf garbage in over-read rows cannot leak into the sums.
            row_ids = row0 + jax.lax.broadcasted_iota(
                jnp.int32, (tile_rows, LANES), 0)
            valid = row_ids < valid_rows
            _accumulate(jnp.where(valid, d, 0.0), jnp.where(valid, m, 0.0))


def masked_mse_loss(inp, target, mask):
    """Pallas equivalent of (((input - target) * mask) ** 2).sum() / mask.sum()."""
    n = int(inp.size)
    x_flat = inp.reshape(-1)
    t_flat = target.reshape(-1)
    m_flat = mask.reshape(-1)

    row_align = max(_rows_per_vreg(a.dtype) for a in (inp, target, mask))
    chunk = row_align * LANES                      # 1024 / 2048 / 4096 elements
    n_main = (n // chunk) * chunk

    def _tail_sums(xs, ts, ms):
        d = (xs.astype(jnp.float32) - ts.astype(jnp.float32)) * ms.astype(jnp.float32)
        return jnp.sum(d * d), jnp.sum(ms.astype(jnp.float32))

    if n_main == 0:
        # Tiny input: not worth a kernel launch.
        num, den = _tail_sums(x_flat, t_flat, m_flat)
        return num / den

    if n_main == n:
        # Common case: copy-free reshape to a lane-dense [rows, 128] slab.
        def slab(a):
            return a.reshape(n_main // LANES, LANES)
        tail_num = jnp.float32(0.0)
        tail_den = jnp.float32(0.0)
    else:
        # Ragged total size: fold the < chunk-element tail in with plain JAX
        # instead of padding all three tensors.  (The aligned prefix slice is
        # still one copy per tensor; acceptable for this rare path.)
        def slab(a):
            return a[:n_main].reshape(n_main // LANES, LANES)
        tail_num, tail_den = _tail_sums(
            x_flat[n_main:], t_flat[n_main:], m_flat[n_main:])

    x2, t2, m2 = slab(x_flat), slab(t_flat), slab(m_flat)
    rows = n_main // LANES                         # multiple of row_align (>= 8)

    max_tile_rows, num_slices = _chip_config()
    tile_rows = min(max_tile_rows, rows)           # multiple of 8 in all cases
    num_tiles = -(-rows // tile_rows)
    tiles_per_slice = -(-num_tiles // num_slices)
    # True iff some block reaches past `rows` (ragged tail / clamped dummies).
    needs_mask = (num_slices * tiles_per_slice * tile_rows != rows)

    def in_map(p, k):
        # Clamp so the DMA of "extra" blocks (uneven split across slices) stays
        # in bounds; the kernel zeroes their contribution.
        return (jnp.minimum(p * tiles_per_slice + k, num_tiles - 1), 0)

    in_spec = pl.BlockSpec((tile_rows, LANES), in_map)
    out_spec = pl.BlockSpec((1, SUBLANES, LANES), lambda p, k: (p, 0, 0))

    kernel = functools.partial(
        _masked_mse_kernel,
        tiles_per_slice=tiles_per_slice,
        tile_rows=tile_rows,
        valid_rows=rows,
        needs_mask=needs_mask,
    )

    num_p, den_p = pl.pallas_call(
        kernel,
        out_shape=(
            jax.ShapeDtypeStruct((num_slices, SUBLANES, LANES), jnp.float32),
            jax.ShapeDtypeStruct((num_slices, SUBLANES, LANES), jnp.float32),
        ),
        grid_spec=pltpu.PrefetchScalarGridSpec(
            num_scalar_prefetch=0,
            grid=(num_slices, tiles_per_slice),
            in_specs=[in_spec, in_spec, in_spec],
            out_specs=[out_spec, out_spec],
        ),
        compiler_params=pltpu.CompilerParams(
            dimension_semantics=("parallel", "arbitrary"),
        ),
    )(x2, t2, m2)

    # Tiny final combine of the per-slice (8,128) partials + divide in plain JAX.
    num = jnp.sum(num_p) + tail_num
    den = jnp.sum(den_p) + tail_den
    return num / den


if __name__ == "__main__":
    key = jax.random.PRNGKey(0)
    k1, k2, k3 = jax.random.split(key, 3)

    shape = (2, 4, 16, 16)  # NCHW-style example input
    x = jax.random.normal(k1, shape, dtype=jnp.float32)
    t = jax.random.normal(k2, shape, dtype=jnp.float32)
    m = (jax.random.uniform(k3, shape) > 0.5).astype(jnp.float32)

    loss = masked_mse_loss(x, t, m)
    jax.block_until_ready(loss)

    # Reference check in plain JAX (f32).
    ref = jnp.sum(((x - t) * m) ** 2) / jnp.sum(m)
    assert jnp.allclose(loss, ref, rtol=1e-5, atol=1e-6), (loss, ref)

    # Native-dtype path: bf16 activations with an f32 mask, no wrapper casts.
    xb = x.astype(jnp.bfloat16)
    tb = t.astype(jnp.bfloat16)
    loss_bf16 = masked_mse_loss(xb, tb, m)
    jax.block_until_ready(loss_bf16)
    ref_bf16 = (jnp.sum(((xb.astype(jnp.float32) - tb.astype(jnp.float32)) * m) ** 2)
                / jnp.sum(m))
    assert jnp.allclose(loss_bf16, ref_bf16, rtol=1e-4, atol=1e-5), (loss_bf16, ref_bf16)

    print("KERNEL_OK")
</pallas_src>

<mosaic_0001>
module attributes {stable_mosaic.version = 11 : i64} {
  func.func @_masked_mse_kernel(%arg0: i32, %arg1: i32, %arg2: memref<16x128xf32, #tpu.memory_space<vmem>>, %arg3: memref<16x128xf32, #tpu.memory_space<vmem>>, %arg4: memref<16x128xf32, #tpu.memory_space<vmem>>, %arg5: memref<1x8x128xf32, #tpu.memory_space<vmem>>, %arg6: memref<1x8x128xf32, #tpu.memory_space<vmem>>) attributes {dimension_semantics = [#tpu.dimension_semantics<parallel>, #tpu.dimension_semantics<arbitrary>], iteration_bounds = array<i64: 1, 1>, scalar_prefetch = 0 : i64, scratch_operands = 0 : i64, tpu.core_type = #tpu.core_type<tc>, window_params = [{transform_indices = @transform_0, window_bounds = array<i64: 16, 128>}, {transform_indices = @transform_1, window_bounds = array<i64: 16, 128>}, {transform_indices = @transform_2, window_bounds = array<i64: 16, 128>}, {transform_indices = @transform_3, window_bounds = array<i64: 1, 8, 128>}, {transform_indices = @transform_4, window_bounds = array<i64: 1, 8, 128>}]} {
    %c0_i32 = arith.constant 0 : i32
    %0 = arith.cmpi eq, %arg1, %c0_i32 : i32
    %1 = arith.extui %0 : i1 to i32
    %c0_i32_0 = arith.constant 0 : i32
    %2 = arith.cmpi ne, %1, %c0_i32_0 : i32
    scf.if %2 {
      %cst_19 = arith.constant 0.000000e+00 : f32
      %25 = vector.broadcast %cst_19 : f32 to vector<1x8x128xf32>
      %c0_20 = arith.constant 0 : index
      %c0_21 = arith.constant 0 : index
      %c0_22 = arith.constant 0 : index
      %26 = vector.load %arg5[%c0_20, %c0_21, %c0_22] : memref<1x8x128xf32, #tpu.memory_space<vmem>>, vector<1x8x128xf32>
      tpu.vector_store %arg5[%c0_20, %c0_21, %c0_22], %25 {strides = array<i32>} : memref<1x8x128xf32, #tpu.memory_space<vmem>>, vector<1x8x128xf32>,
      %cst_23 = arith.constant 0.000000e+00 : f32
      %27 = vector.broadcast %cst_23 : f32 to vector<1x8x128xf32>
      %c0_24 = arith.constant 0 : index
      %c0_25 = arith.constant 0 : index
      %c0_26 = arith.constant 0 : index
      %28 = vector.load %arg6[%c0_24, %c0_25, %c0_26] : memref<1x8x128xf32, #tpu.memory_space<vmem>>, vector<1x8x128xf32>
      tpu.vector_store %arg6[%c0_24, %c0_25, %c0_26], %27 {strides = array<i32>} : memref<1x8x128xf32, #tpu.memory_space<vmem>>, vector<1x8x128xf32>,
    } else {
    }
    %c0 = arith.constant 0 : index
    %c0_1 = arith.constant 0 : index
    %3 = vector.load %arg2[%c0, %c0_1] : memref<16x128xf32, #tpu.memory_space<vmem>>, vector<16x128xf32>
    %c0_2 = arith.constant 0 : index
    %c0_3 = arith.constant 0 : index
    %4 = vector.load %arg3[%c0_2, %c0_3] : memref<16x128xf32, #tpu.memory_space<vmem>>, vector<16x128xf32>
    %c0_4 = arith.constant 0 : index
    %c0_5 = arith.constant 0 : index
    %5 = vector.load %arg4[%c0_4, %c0_5] : memref<16x128xf32, #tpu.memory_space<vmem>>, vector<16x128xf32>
    %6 = arith.subf %3, %4 : vector<16x128xf32>
    %7 = arith.mulf %6, %5 : vector<16x128xf32>
    %c0_6 = arith.constant 0 : index
    %c0_7 = arith.constant 0 : index
    %c0_8 = arith.constant 0 : index
    %8 = vector.load %arg5[%c0_6, %c0_7, %c0_8] : memref<1x8x128xf32, #tpu.memory_space<vmem>>, vector<1x8x128xf32>
    %9 = vector.shape_cast %8 : vector<1x8x128xf32> to vector<8x128xf32>
    %10 = arith.mulf %7, %7 : vector<16x128xf32>
    %11 = vector.shape_cast %10 : vector<16x128xf32> to vector<2x8x128xf32>
    %cst = arith.constant dense<0.000000e+00> : vector<8x128xf32>
    %12 = vector.multi_reduction <add>, %11, %cst [0] : vector<2x8x128xf32> to vector<8x128xf32>
    %13 = arith.addf %9, %12 : vector<8x128xf32>
    %c0_9 = arith.constant 0 : index
    %c0_10 = arith.constant 0 : index
    %c0_11 = arith.constant 0 : index
    %14 = vector.load %arg5[%c0_9, %c0_10, %c0_11] : memref<1x8x128xf32, #tpu.memory_space<vmem>>, vector<1x8x128xf32>
    %15 = vector.shape_cast %14 : vector<1x8x128xf32> to vector<8x128xf32>
    %16 = vector.shape_cast %13 : vector<8x128xf32> to vector<1x8x128xf32>
    tpu.vector_store %arg5[%c0_9, %c0_10, %c0_11], %16 {strides = array<i32>} : memref<1x8x128xf32, #tpu.memory_space<vmem>>, vector<1x8x128xf32>,
    %c0_12 = arith.constant 0 : index
    %c0_13 = arith.constant 0 : index
    %c0_14 = arith.constant 0 : index
    %17 = vector.load %arg6[%c0_12, %c0_13, %c0_14] : memref<1x8x128xf32, #tpu.memory_space<vmem>>, vector<1x8x128xf32>
    %18 = vector.shape_cast %17 : vector<1x8x128xf32> to vector<8x128xf32>
    %19 = vector.shape_cast %5 : vector<16x128xf32> to vector<2x8x128xf32>
    %cst_15 = arith.constant dense<0.000000e+00> : vector<8x128xf32>
    %20 = vector.multi_reduction <add>, %19, %cst_15 [0] : vector<2x8x128xf32> to vector<8x128xf32>
    %21 = arith.addf %18, %20 : vector<8x128xf32>
    %c0_16 = arith.constant 0 : index
    %c0_17 = arith.constant 0 : index
    %c0_18 = arith.constant 0 : index
    %22 = vector.load %arg6[%c0_16, %c0_17, %c0_18] : memref<1x8x128xf32, #tpu.memory_space<vmem>>, vector<1x8x128xf32>
    %23 = vector.shape_cast %22 : vector<1x8x128xf32> to vector<8x128xf32>
    %24 = vector.shape_cast %21 : vector<8x128xf32> to vector<1x8x128xf32>
    tpu.vector_store %arg6[%c0_16, %c0_17, %c0_18], %24 {strides = array<i32>} : memref<1x8x128xf32, #tpu.memory_space<vmem>>, vector<1x8x128xf32>,
    return
  }
  func.func @transform_0(%arg0: i32, %arg1: i32) -> (i32, i32) {
    %c1_i32 = arith.constant 1 : i32
    %0 = arith.muli %arg0, %c1_i32 : i32
    %1 = arith.addi %0, %arg1 : i32
    %c0_i32 = arith.constant 0 : i32
    %2 = arith.minsi %1, %c0_i32 : i32
    %c0_i32_0 = arith.constant 0 : i32
    %c0_i32_1 = arith.constant 0 : i32
    return %2, %c0_i32_0 : i32, i32
  }
  func.func @transform_1(%arg0: i32, %arg1: i32) -> (i32, i32) {
    %c1_i32 = arith.constant 1 : i32
    %0 = arith.muli %arg0, %c1_i32 : i32
    %1 = arith.addi %0, %arg1 : i32
    %c0_i32 = arith.constant 0 : i32
    %2 = arith.minsi %1, %c0_i32 : i32
    %c0_i32_0 = arith.constant 0 : i32
    %c0_i32_1 = arith.constant 0 : i32
    return %2, %c0_i32_0 : i32, i32
  }
  func.func @transform_2(%arg0: i32, %arg1: i32) -> (i32, i32) {
    %c1_i32 = arith.constant 1 : i32
    %0 = arith.muli %arg0, %c1_i32 : i32
    %1 = arith.addi %0, %arg1 : i32
    %c0_i32 = arith.constant 0 : i32
    %2 = arith.minsi %1, %c0_i32 : i32
    %c0_i32_0 = arith.constant 0 : i32
    %c0_i32_1 = arith.constant 0 : i32
    return %2, %c0_i32_0 : i32, i32
  }
  func.func @transform_3(%arg0: i32, %arg1: i32) -> (i32, i32, i32) {
    %c0_i32 = arith.constant 0 : i32
    %c0_i32_0 = arith.constant 0 : i32
    %c0_i32_1 = arith.constant 0 : i32
    return %arg0, %c0_i32, %c0_i32_0 : i32, i32, i32
  }
  func.func @transform_4(%arg0: i32, %arg1: i32) -> (i32, i32, i32) {
    %c0_i32 = arith.constant 0 : i32
    %c0_i32_0 = arith.constant 0 : i32
    %c0_i32_1 = arith.constant 0 : i32
    return %arg0, %c0_i32, %c0_i32_0 : i32, i32, i32
  }
}

</mosaic_0001>

<bundles_post_ra>
// kernel: tpu_custom_call.1
= control target key start
LH: loop header
LB: loop body
LE: loop exit
PB: predicated region body
PF: predicated region fallthrough
CT: control target
= control target key end

     0   :  { %10 = vsyncpa [#allocation3], 0  ;;  %s344_s0 = inlined_call_operand.hbm [shape: f32[16,128], index: 0, kind: input, shape index: {}]   ;;  %s345_s1 = inlined_call_operand.hbm [shape: f32[16,128], index: 1, kind: input, shape index: {}]   ;;  %s346_s2 = inlined_call_operand.hbm [shape: f32[16,128], index: 2, kind: input, shape index: {}]   ;;  %s347_s3 = inlined_call_operand.hbm [shape: f32[1,8,128], index: 3, kind: output, shape index: {0}]   ;;  %s348_s4 = inlined_call_operand.hbm [shape: f32[1,8,128], index: 4, kind: output, shape index: {1}]  }
   0x1   :  { %11 = vsyncpa [#allocation6], 0 }
   0x2   :  { %12 = vsyncpa [#allocation4], 0 }
   0x3   :  { %13 = vsyncpa [#allocation10], 0  ;;  %s43_s17 = sshll.u32 %s345_s1, 4  ;;  %s297_s18 = smov [#allocation5]   ;;  %s44_s17 = int_to_ptr.hbm [resolvable:$true] %s43_s17 }
   0x4   :  { %s45_s19 = sshll.u32 %s297_s18, 4  ;;  %s24_s22 = sshll.u32 %s344_s0, 4  ;;  %s46_s19 = int_to_ptr.vmem [resolvable:$true] %s45_s19  ;;  %s25_s22 = int_to_ptr.hbm [resolvable:$true] %s24_s22 }
   0x5   :  { %s298_s23 = smov 128   ;;  %s299_s24 = smov 8  }
   0x6   :  { %51 = dma.hbm_to_vmem [thread:$0]  %s44_s17, 256, %s46_s19, [#allocation6], %s298_s23, %s298_s23, %s299_s24  }
   0x7   :  { %s300_s25 = smov [#allocation2]   ;;  %s62_s29 = sshll.u32 %s346_s2, 4  ;;  %s63_s29 = int_to_ptr.hbm [resolvable:$true] %s62_s29 }
   0x8   :  { %s26_s26 = sshll.u32 %s300_s25, 4  ;;  %s301_s1 = smov [#allocation7]   ;;  %s27_s26 = int_to_ptr.vmem [resolvable:$true] %s26_s26 }
   0x9   :  { %32 = dma.hbm_to_vmem [thread:$0]  %s25_s22, 256, %s27_s26, [#allocation3], %s298_s23, %s298_s23, %s299_s24  }
   0xa   :  { %s64_s30 = sshll.u32 %s301_s1, 4  ;;  %s65_s30 = int_to_ptr.vmem [resolvable:$true] %s64_s30 }
   0xb   :  { %70 = dma.hbm_to_vmem [thread:$0]  %s63_s29, 256, %s65_s30, [#allocation6], %s298_s23, %s298_s23, %s299_s24  }
   0xc   :  { %289 = dma.done.wait [#allocation3], 256  }
   0xd   :  { %290 = vsyncadd [#allocation3], 4294967040 }
   0xe   :  { %291 = dma.done.wait [#allocation6], 512  }
   0xf   :  { %292 = vsyncadd [#allocation6], 4294966784  ;;  %v101_v0 = vld [vmem:[#allocation2] sm:$0xff]  ;;  %v102_v1 = vld [vmem:[#allocation2 + $0x8] sm:$0xff]  ;;  %s302_s0 = smov [#allocation9]   ;;  %s139_s7 = sshll.u32 %s348_s4, 4  ;;  %s140_s7 = int_to_ptr.hbm [resolvable:$true] %s139_s7 }
  0x10   :  { %v103_v2 = vld [vmem:[#allocation5] sm:$0xff]  ;;  %v104_v3 = vld [vmem:[#allocation5 + $0x8] sm:$0xff]  ;;  %v105_v4 = vld [vmem:[#allocation7] sm:$0xff]  ;;  %s137_s2 = sshll.u32 %s302_s0, 4  ;;  %s303_s8 = smov [#allocation8]   ;;  %s138_s2 = int_to_ptr.vmem [resolvable:$true] %s137_s2 }
  0x11   :  { %v106_v5 = vld [vmem:[#allocation7 + $0x8] sm:$0xff]  ;;  %v107_v6 = vsub.f32 %v101_v0, %v103_v2  ;;  %v108_v7 = vsub.f32 %v102_v1, %v104_v3  ;;  %s126_s9 = sshll.u32 %s303_s8, 4  ;;  %s128_s12 = sshll.u32 %s347_s3, 4  ;;  %s127_s9 = int_to_ptr.vmem [resolvable:$true] %s126_s9  ;;  %s129_s12 = int_to_ptr.hbm [resolvable:$true] %s128_s12 }
  0x12   :  { %v118_v8 = vadd.f32 %v106_v5, %v105_v4 }
  0x13   :  { %v109_v9 = vmul.f32 %v107_v6, %v105_v4  ;;  %v110_v10 = vmul.f32 %v108_v7, %v106_v5 }
  0x14   :  { %120 = vst [vmem:[#allocation9] sm:$0xff] %v118_v8 }
  0x15   :  { %v112_v11 = vmul.f32 %v109_v9, %v109_v9  ;;  %v113_v12 = vmul.f32 %v110_v10, %v110_v10  ;;  %142 = dma.vmem_to_hbm [thread:$0]  %s138_s2, 128, %s140_s7, [#allocation10]  }
  0x17   :  { %v114_v13 = vadd.f32 %v113_v12, %v112_v11 }
  0x19   :  { %116 = vst [vmem:[#allocation8] sm:$0xff] %v114_v13 }
  0x1a   :  { %131 = dma.vmem_to_hbm [thread:$0]  %s127_s9, 128, %s129_s12, [#allocation4]  }
  0x1b   :  { %293 = dma.done.wait [#allocation4], 128  }
  0x1c   :  { %294 = vsyncadd [#allocation4], 4294967168 }
  0x1d   :  { %295 = dma.done.wait [#allocation10], 128  }
  0x1e   :  { %296 = vsyncadd [#allocation10], 4294967168 }
  0x1f   :  { %151 = vsyncpa [#allocation3], 1 }
  0x20   :  { %152 = vsyncpa [#allocation6], 1 }
  0x21   :  { %153 = vsyncpa [#allocation4], 1 }
  0x22   :  { %154 = vsyncpa [#allocation10], 1 }

</bundles_post_ra>
